<compile_context>
chip_gen: v6e
topology: v6e:2x2x1
jax: 0.10.0
libtpu: 0.0.40
codegen_flags: <defaults>
</compile_context>

<pallas_src>
import jax
import jax.numpy as jnp
from jax.experimental import pallas as pl
from jax.experimental.pallas import tpu as pltpu


def _round_up(x: int, m: int) -> int:
    return ((x + m - 1) // m) * m


def _vmem_capacity_bytes() -> int:
    """Physical VMEM of the current TPU generation (conservative fallback)."""
    try:
        info = pltpu.get_tpu_info()
        cap = getattr(info, "vmem_capacity_bytes", None)
        if cap:
            return int(cap)
    except Exception:
        pass
    return 64 << 20  # assume the smallest (v7x per-TensorCore) if unknown


def _per_molecule_sq_err_kernel(pred_ref, true_ref, counts_ref, out_ref):
    # pred_ref / true_ref : (block_n, D)  -- native layout, D on lanes
    # counts_ref / out_ref: (block_n, 1)
    diff = pred_ref[...] - true_ref[...]                       # VPU
    err = jnp.sum(diff * diff, axis=1, keepdims=True)          # XLU cross-lane reduce -> (block_n, 1)
    # Exact division (matches the reference err / (prefactor * counts) numerics).
    out_ref[...] = err / counts_ref[...]


def _per_molecule_squared_error_xla(pred, true, counts_scaled):
    err = jnp.sum((pred - true) ** 2, axis=1, keepdims=True)
    return err / counts_scaled


def per_molecule_squared_error(per_molecule_prediction,
                               per_molecule_reference,
                               atomic_subsystem_counts,
                               *,
                               prefactor: float = 1.0,
                               scale_by_number_of_atoms: bool = True,
                               block_n: int | None = None,
                               use_kernel: bool | None = None):
    """
    per_molecule_prediction : (N, D) float
    per_molecule_reference  : (N, D) float
    atomic_subsystem_counts : (N,)   float/int
    returns                 : (N, 1) float32
    """
    pred = jnp.asarray(per_molecule_prediction, dtype=jnp.float32)
    true = jnp.asarray(per_molecule_reference, dtype=jnp.float32)
    if pred.ndim == 1:
        pred = pred.reshape(-1, 1)
        true = true.reshape(-1, 1)
    N, D = pred.shape

    counts = jnp.asarray(atomic_subsystem_counts, dtype=jnp.float32).reshape(-1)
    if scale_by_number_of_atoms:
        counts_scaled = (jnp.float32(prefactor) * counts).reshape(N, 1)
    else:
        counts_scaled = jnp.ones((N, 1), dtype=jnp.float32)

    # --- tiny problems: fused XLA beats any pallas_call launch ---------------
    if use_kernel is None:
        use_kernel = (N * D * 4) >= (256 << 10)
    if not use_kernel:
        return _per_molecule_squared_error_xla(pred, true, counts_scaled)

    # --- generation-aware VMEM budget ----------------------------------------
    vmem_cap = _vmem_capacity_bytes()
    if vmem_cap >= (96 << 20):          # v5e / v6e: 128 MiB physical VMEM
        buf_budget = 56 << 20
        vmem_ceiling = 80 << 20
    else:                                # v7x: 64 MiB physical per TensorCore
        buf_budget = 24 << 20
        vmem_ceiling = 40 << 20

    # VMEM bytes per molecule-row for one pipeline buffer set:
    #   2 input blocks lane-padded to >=128 lanes + (counts + out) blocks
    pD = _round_up(max(D, 1), 128)
    bytes_per_row = 2 * 4 * pD + 2 * 4 * 128

    if block_n is None:
        bn_cap = max(8, (buf_budget // (2 * bytes_per_row)) // 8 * 8)  # double-buffered
        if N <= bn_cap:
            block_n = N                          # single full-array block (no boundary)
        else:
            num_steps = pl.cdiv(N, bn_cap)
            if num_steps % 2:                    # balance across the 2 v7x TensorCores
                num_steps += 1
            block_n = _round_up(pl.cdiv(N, num_steps), 8)
    assert block_n == N or block_n % 8 == 0

    grid = (pl.cdiv(N, block_n),)

    # --- VMEM limit: actual double-buffered block bytes + slack ---------------
    per_buffer_set = 4 * _round_up(block_n, 8) * (2 * pD + 2 * 128)
    needed = 2 * per_buffer_set + (2 << 20)
    vmem_limit = int(min(vmem_ceiling, max(needed, 16 << 20)))

    out = pl.pallas_call(
        _per_molecule_sq_err_kernel,
        out_shape=jax.ShapeDtypeStruct((N, 1), jnp.float32),
        grid_spec=pltpu.PrefetchScalarGridSpec(
            num_scalar_prefetch=0,
            grid=grid,
            in_specs=[
                pl.BlockSpec((block_n, D), lambda i: (i, 0)),
                pl.BlockSpec((block_n, D), lambda i: (i, 0)),
                pl.BlockSpec((block_n, 1), lambda i: (i, 0)),
            ],
            out_specs=pl.BlockSpec((block_n, 1), lambda i: (i, 0)),
        ),
        compiler_params=pltpu.CompilerParams(
            dimension_semantics=("parallel",),
            vmem_limit_bytes=vmem_limit,
        ),
    )(pred, true, counts_scaled)

    return out


if __name__ == "__main__":
    # Deterministic small example: 300 molecules, property dim 8.
    key = jax.random.PRNGKey(0)
    k1, k2, k3 = jax.random.split(key, 3)

    N, D = 300, 8
    pred = jax.random.normal(k1, (N, D), dtype=jnp.float32)
    ref = jax.random.normal(k2, (N, D), dtype=jnp.float32)
    counts = jax.random.randint(k3, (N,), minval=1, maxval=20).astype(jnp.float32)

    # Pure-JAX reference (mirrors the PyTorch module's forward).
    expected = jnp.sum((pred - ref) ** 2, axis=1, keepdims=True) / counts[:, None]

    # 1) Force the kernel path (the problem is tiny, so auto-dispatch would use XLA):
    #    single full-array block, grid == 1.
    out = per_molecule_squared_error(pred, ref, counts, use_kernel=True)
    out = jax.block_until_ready(out)
    assert out.shape == (N, 1)
    assert jnp.allclose(out, expected, rtol=1e-5, atol=1e-6)

    # 2) Exercise the multi-block ragged path (boundary block handling) with an
    #    explicit small block size: grid = cdiv(300, 128) = 3, last block ragged.
    out_ragged = per_molecule_squared_error(pred, ref, counts,
                                            use_kernel=True, block_n=128)
    out_ragged = jax.block_until_ready(out_ragged)
    assert out_ragged.shape == (N, 1)
    assert jnp.allclose(out_ragged, expected, rtol=1e-5, atol=1e-6)

    print("KERNEL_OK")
</pallas_src>

<mosaic_0001>
module attributes {stable_mosaic.version = 11 : i64} {
  func.func @_per_molecule_sq_err_kernel(%arg0: i32, %arg1: memref<300x8xf32, #tpu.memory_space<vmem>>, %arg2: memref<300x8xf32, #tpu.memory_space<vmem>>, %arg3: memref<300x1xf32, #tpu.memory_space<vmem>>, %arg4: memref<300x1xf32, #tpu.memory_space<vmem>>) attributes {dimension_semantics = [#tpu.dimension_semantics<parallel>], iteration_bounds = array<i64: 1>, scalar_prefetch = 0 : i64, scratch_operands = 0 : i64, tpu.core_type = #tpu.core_type<tc>, window_params = [{transform_indices = @transform_0, window_bounds = array<i64: 300, 8>}, {transform_indices = @transform_1, window_bounds = array<i64: 300, 8>}, {transform_indices = @transform_2, window_bounds = array<i64: 300, 1>}, {transform_indices = @transform_3, window_bounds = array<i64: 300, 1>}]} {
    %c0 = arith.constant 0 : index
    %c0_0 = arith.constant 0 : index
    %0 = vector.load %arg1[%c0, %c0_0] : memref<300x8xf32, #tpu.memory_space<vmem>>, vector<300x8xf32>
    %c0_1 = arith.constant 0 : index
    %c0_2 = arith.constant 0 : index
    %1 = vector.load %arg2[%c0_1, %c0_2] : memref<300x8xf32, #tpu.memory_space<vmem>>, vector<300x8xf32>
    %2 = arith.subf %0, %1 : vector<300x8xf32>
    %3 = arith.mulf %2, %2 : vector<300x8xf32>
    %cst = arith.constant dense<0.000000e+00> : vector<300xf32>
    %4 = vector.multi_reduction <add>, %3, %cst [1] : vector<300x8xf32> to vector<300xf32>
    %5 = vector.shape_cast %4 : vector<300xf32> to vector<300x1xf32>
    %c0_3 = arith.constant 0 : index
    %c0_4 = arith.constant 0 : index
    %6 = vector.load %arg3[%c0_3, %c0_4] : memref<300x1xf32, #tpu.memory_space<vmem>>, vector<300x1xf32>
    %7 = arith.divf %5, %6 : vector<300x1xf32>
    %c0_5 = arith.constant 0 : index
    %c0_6 = arith.constant 0 : index
    %8 = vector.load %arg4[%c0_5, %c0_6] : memref<300x1xf32, #tpu.memory_space<vmem>>, vector<300x1xf32>
    tpu.vector_store %arg4[%c0_5, %c0_6], %7 {strides = array<i32>} : memref<300x1xf32, #tpu.memory_space<vmem>>, vector<300x1xf32>,
    return
  }
  func.func @transform_0(%arg0: i32) -> (i32, i32) {
    %c0_i32 = arith.constant 0 : i32
    %c0_i32_0 = arith.constant 0 : i32
    return %arg0, %c0_i32 : i32, i32
  }
  func.func @transform_1(%arg0: i32) -> (i32, i32) {
    %c0_i32 = arith.constant 0 : i32
    %c0_i32_0 = arith.constant 0 : i32
    return %arg0, %c0_i32 : i32, i32
  }
  func.func @transform_2(%arg0: i32) -> (i32, i32) {
    %c0_i32 = arith.constant 0 : i32
    %c0_i32_0 = arith.constant 0 : i32
    return %arg0, %c0_i32 : i32, i32
  }
  func.func @transform_3(%arg0: i32) -> (i32, i32) {
    %c0_i32 = arith.constant 0 : i32
    %c0_i32_0 = arith.constant 0 : i32
    return %arg0, %c0_i32 : i32, i32
  }
}

</mosaic_0001>

<bundles_post_ra>
// kernel: tpu_custom_call.1
= control target key start
LH: loop header
LB: loop body
LE: loop exit
PB: predicated region body
PF: predicated region fallthrough
CT: control target
= control target key end

     0   :  { %vm166_vm0 = vcmask 64512   ;;  %vm278_vm1 = vcmask 60416   ;;  %vm396_vm2 = vcmask 7168   ;;  %vm434_vm3 = vcmask 3072   ;;  %s1085_s0 = inlined_call_operand.vmem [shape: f32[300,8], index: 0, kind: input, shape index: {}]   ;;  %s1086_s1 = inlined_call_operand.vmem [shape: f32[300,8], index: 1, kind: input, shape index: {}]   ;;  %s1087_s2 = inlined_call_operand.vmem [shape: f32[300,1], index: 2, kind: input, shape index: {}]   ;;  %s1088_s3 = inlined_call_operand.vmem [shape: f32[300,1], index: 3, kind: output, shape index: {}]  }
   0x1   :  { %v16_v0 = vld [vmem:[%s1085_s0 + $0x10] sm:$0xff]  ;;  %v14_v2 = vld [vmem:[%s1085_s0] sm:$0xff]  ;;  %v17_v5 = vld [vmem:[%s1085_s0 + $0x18] sm:$0xff] }
   0x2   :  { %v54_v1 = vld [vmem:[%s1086_s1 + $0x10] sm:$0xff]  ;;  %v52_v4 = vld [vmem:[%s1086_s1] sm:$0xff]  ;;  %v55_v6 = vld [vmem:[%s1086_s1 + $0x18] sm:$0xff] }
   0x3   :  { %v92_v3 = vsub.f32 %v16_v0, %v54_v1  ;;  %v90_v7 = vsub.f32 %v14_v2, %v52_v4  ;;  %v93_v8 = vsub.f32 %v17_v5, %v55_v6  ;;  %v15_v9 = vld [vmem:[%s1085_s0 + $0x8] sm:$0xff]  ;;  %v18_v15 = vld [vmem:[%s1085_s0 + $0x20] sm:$0xff]  ;;  %v21_v21 = vld [vmem:[%s1085_s0 + $0x38] sm:$0xff] }
   0x4   :  { %v53_v10 = vld [vmem:[%s1086_s1 + $0x8] sm:$0xff]  ;;  %v56_v16 = vld [vmem:[%s1086_s1 + $0x20] sm:$0xff]  ;;  %v59_v22 = vld [vmem:[%s1086_s1 + $0x38] sm:$0xff] }
   0x5   :  { %v19_v11 = vld [vmem:[%s1085_s0 + $0x28] sm:$0xff]  ;;  %v130_v12 = vmul.f32 %v92_v3, %v92_v3  ;;  %v91_v13 = vsub.f32 %v15_v9, %v53_v10  ;;  %v128_v17 = vmul.f32 %v90_v7, %v90_v7  ;;  %v131_v18 = vmul.f32 %v93_v8, %v93_v8  ;;  %v20_v25 = vld [vmem:[%s1085_s0 + $0x30] sm:$0xff]  ;;  %v22_v36 = vld [vmem:[%s1085_s0 + $0x40] sm:$0xff] }
   0x6   :  { %v57_v14 = vld [vmem:[%s1086_s1 + $0x28] sm:$0xff]  ;;  %v94_v20 = vsub.f32 %v18_v15, %v56_v16  ;;  %v58_v26 = vld [vmem:[%s1086_s1 + $0x30] sm:$0xff]  ;;  %v97_v30 = vsub.f32 %v21_v21, %v59_v22  ;;  %v60_v37 = vld [vmem:[%s1086_s1 + $0x40] sm:$0xff] }
   0x7   :  { %v95_v19 = vsub.f32 %v19_v11, %v57_v14  ;;  %v173_v23 = vsel %vm166_vm0, %v130_v12, 0.0  ;;  %v129_v24 = vmul.f32 %v91_v13, %v91_v13  ;;  %v167_v27 = vsel %vm166_vm0, %v128_v17, 0.0  ;;  %v23_v34 = vld [vmem:[%s1085_s0 + $0x48] sm:$0xff]  ;;  %v25_v44 = vld [vmem:[%s1085_s0 + $0x58] sm:$0xff]  ;;  %v24_v46 = vld [vmem:[%s1085_s0 + $0x50] sm:$0xff] }
   0x8   :  { %174 = vadd.xlane.f32.xlu1 %v173_v23  ;;  %168 = vadd.xlane.f32.xlu0 %v167_v27  ;;  %v176_v28 = vsel %vm166_vm0, %v131_v18, 0.0  ;;  %v132_v32 = vmul.f32 %v94_v20, %v94_v20  ;;  %v96_v33 = vsub.f32 %v20_v25, %v58_v26  ;;  %v61_v35 = vld [vmem:[%s1086_s1 + $0x48] sm:$0xff]  ;;  %v135_v39 = vmul.f32 %v97_v30, %v97_v30  ;;  %v63_v45 = vld [vmem:[%s1086_s1 + $0x58] sm:$0xff]  ;;  %v62_v47 = vld [vmem:[%s1086_s1 + $0x50] sm:$0xff] }
   0x9   :  { %v133_v29 = vmul.f32 %v95_v19, %v95_v19  ;;  %v170_v31 = vsel %vm166_vm0, %v129_v24, 0.0  ;;  %v99_v40 = vsub.f32 %v23_v34, %v61_v35  ;;  %v98_v43 = vsub.f32 %v22_v36, %v60_v37  ;;  %v27_v48 = vld [vmem:[%s1085_s0 + $0x68] sm:$0xff]  ;;  %v26_v53 = vld [vmem:[%s1085_s0 + $0x60] sm:$0xff]  ;;  %v29_v60 = vld [vmem:[%s1085_s0 + $0x78] sm:$0xff] }
   0xa   :  { %v179_v41 = vsel %vm166_vm0, %v132_v32, 0.0  ;;  %v134_v42 = vmul.f32 %v96_v33, %v96_v33  ;;  %v188_v49 = vsel %vm166_vm0, %v135_v39, 0.0  ;;  %v101_v51 = vsub.f32 %v25_v44, %v63_v45  ;;  %v65_v52 = vld [vmem:[%s1086_s1 + $0x68] sm:$0xff]  ;;  %v64_v54 = vld [vmem:[%s1086_s1 + $0x60] sm:$0xff]  ;;  %v67_v61 = vld [vmem:[%s1086_s1 + $0x78] sm:$0xff] }
   0xb   :  { %v182_v38 = vsel %vm166_vm0, %v133_v29, 0.0  ;;  %v137_v50 = vmul.f32 %v99_v40, %v99_v40  ;;  %v136_v56 = vmul.f32 %v98_v43, %v98_v43  ;;  %v100_v57 = vsub.f32 %v24_v46, %v62_v47  ;;  %v28_v2 = vld [vmem:[%s1085_s0 + $0x70] sm:$0xff]  ;;  %v31_v5 = vld [vmem:[%s1085_s0 + $0x88] sm:$0xff]  ;;  %v30_v9 = vld [vmem:[%s1085_s0 + $0x80] sm:$0xff] }
   0xc   :  { %177 = vadd.xlane.f32.xlu1 %v176_v28  ;;  %171 = vadd.xlane.f32.xlu0 %v170_v31  ;;  %v185_v55 = vsel %vm166_vm0, %v134_v42, 0.0  ;;  %v103_v58 = vsub.f32 %v27_v48, %v65_v52  ;;  %v102_v59 = vsub.f32 %v26_v53, %v64_v54  ;;  %v139_v63 = vmul.f32 %v101_v51, %v101_v51  ;;  %v66_v3 = vld [vmem:[%s1086_s1 + $0x70] sm:$0xff]  ;;  %v69_v6 = vld [vmem:[%s1086_s1 + $0x88] sm:$0xff]  ;;  %v68_v10 = vld [vmem:[%s1086_s1 + $0x80] sm:$0xff] }
   0xd   :  { %v194_v62 = vsel %vm166_vm0, %v137_v50, 0.0  ;;  %v191_v0 = vsel %vm166_vm0, %v136_v56, 0.0  ;;  %v138_v1 = vmul.f32 %v100_v57, %v100_v57  ;;  %v105_v4 = vsub.f32 %v29_v60, %v67_v61  ;;  %v47_v11 = vld [vmem:[%s1085_s0 + $0x108] sm:$0xff]  ;;  %v46_v13 = vld [vmem:[%s1085_s0 + $0x100] sm:$0xff]  ;;  %v49_v17 = vld [vmem:[%s1085_s0 + $0x118] sm:$0xff] }
   0xe   :  { %v141_v7 = vmul.f32 %v103_v58, %v103_v58  ;;  %v140_v8 = vmul.f32 %v102_v59, %v102_v59  ;;  %v85_v12 = vld [vmem:[%s1086_s1 + $0x108] sm:$0xff]  ;;  %v200_v14 = vsel %vm166_vm0, %v139_v63, 0.0  ;;  %v104_v15 = vsub.f32 %v28_v2, %v66_v3  ;;  %v84_v16 = vld [vmem:[%s1086_s1 + $0x100] sm:$0xff]  ;;  %v87_v18 = vld [vmem:[%s1086_s1 + $0x118] sm:$0xff] }
   0xf   :  { %v197_v19 = vsel %vm166_vm0, %v138_v1, 0.0  ;;  %v48_v20 = vld [vmem:[%s1085_s0 + $0x110] sm:$0xff]  ;;  %v51_v22 = vld [vmem:[%s1085_s0 + $0x128] sm:$0xf]  ;;  %v143_v23 = vmul.f32 %v105_v4, %v105_v4  ;;  %v107_v24 = vsub.f32 %v31_v5, %v69_v6  ;;  %v123_v25 = vsub.f32 %v47_v11, %v85_v12  ;;  %v50_v27 = vld [vmem:[%s1085_s0 + $0x120] sm:$0xff] }
  0x10   :  { %183 = vadd.xlane.f32.xlu1 %v182_v38  ;;  %180 = vadd.xlane.f32.xlu0 %v179_v41  ;;  %v86_v21 = vld [vmem:[%s1086_s1 + $0x110] sm:$0xff]  ;;  %v89_v26 = vld [vmem:[%s1086_s1 + $0x128] sm:$0xf]  ;;  %v88_v28 = vld [vmem:[%s1086_s1 + $0x120] sm:$0xff]  ;;  %v206_v29 = vsel %vm166_vm0, %v141_v7, 0.0  ;;  %v203_v30 = vsel %vm166_vm0, %v140_v8, 0.0  ;;  %v122_v31 = vsub.f32 %v46_v13, %v84_v16  ;;  %v125_v32 = vsub.f32 %v49_v17, %v87_v18 }
  0x11   :  { %v142_v33 = vmul.f32 %v104_v15, %v104_v15  ;;  %v106_v34 = vsub.f32 %v30_v9, %v68_v10  ;;  %v161_v35 = vmul.f32 %v123_v25, %v123_v25  ;;  %v124_v36 = vsub.f32 %v48_v20, %v86_v21  ;;  %v33_v37 = vld [vmem:[%s1085_s0 + $0x98] sm:$0xff]  ;;  %v32_v43 = vld [vmem:[%s1085_s0 + $0x90] sm:$0xff]  ;;  %v35_v57 = vld [vmem:[%s1085_s0 + $0xa8] sm:$0xff] }
  0x12   :  { %v71_v38 = vld [vmem:[%s1086_s1 + $0x98] sm:$0xff]  ;;  %v160_v39 = vmul.f32 %v122_v31, %v122_v31  ;;  %v163_v40 = vmul.f32 %v125_v32, %v125_v32  ;;  %v700_v41 = vsub.f32 %v51_v22, %v89_v26  ;;  %v126_v42 = vsub.f32 %v50_v27, %v88_v28  ;;  %v70_v44 = vld [vmem:[%s1086_s1 + $0x90] sm:$0xff]  ;;  %v73_v58 = vld [vmem:[%s1086_s1 + $0xa8] sm:$0xff] }
  0x13   :  { %v709_v45 = vsel %vm166_vm0, %v161_v35, 0.0  ;;  %v162_v46 = vmul.f32 %v124_v36, %v124_v36  ;;  %v212_v50 = vsel %vm166_vm0, %v143_v23, 0.0  ;;  %v145_v51 = vmul.f32 %v107_v24, %v107_v24  ;;  %v34_v60 = vld [vmem:[%s1085_s0 + $0xa0] sm:$0xff]  ;;  %v37_v4 = vld [vmem:[%s1085_s0 + $0xb8] sm:$0xff]  ;;  %v36_v6 = vld [vmem:[%s1085_s0 + $0xb0] sm:$0xff] }
  0x14   :  { %189 = vadd.xlane.f32.xlu1 %v188_v49  ;;  %186 = vadd.xlane.f32.xlu0 %v185_v55  ;;  %v712_v47 = vsel %vm166_vm0, %v160_v39, 0.0  ;;  %v715_v48 = vsel %vm166_vm0, %v163_v40, 0.0  ;;  %v164_v49 = vmul.f32 %v126_v42, %v126_v42  ;;  %v109_v52 = vsub.f32 %v33_v37, %v71_v38  ;;  %v72_v61 = vld [vmem:[%s1086_s1 + $0xa0] sm:$0xff]  ;;  %v75_v5 = vld [vmem:[%s1086_s1 + $0xb8] sm:$0xff]  ;;  %v74_v7 = vld [vmem:[%s1086_s1 + $0xb0] sm:$0xff] }
  0x15   :  { %v719_v53 = vsel %vm166_vm0, %v162_v46, 0.0  ;;  %v209_v54 = vsel %vm166_vm0, %v142_v33, 0.0  ;;  %v144_v55 = vmul.f32 %v106_v34, %v106_v34  ;;  %v108_v56 = vsub.f32 %v32_v43, %v70_v44  ;;  %v77_v15 = vld [vmem:[%s1086_s1 + $0xc8] sm:$0xff]  ;;  %v38_v16 = vld [vmem:[%s1085_s0 + $0xc0] sm:$0xff]  ;;  %v41_v24 = vld [vmem:[%s1085_s0 + $0xd8] sm:$0xff] }
  0x16   :  { %v729_v59 = vsel %vm166_vm0, %v164_v49, 0.0  ;;  %v147_v63 = vmul.f32 %v109_v52, %v109_v52  ;;  %v110_v3 = vsub.f32 %v34_v60, %v72_v61  ;;  %v113_v10 = vsub.f32 %v37_v4, %v75_v5  ;;  %v76_v17 = vld [vmem:[%s1086_s1 + $0xc0] sm:$0xff]  ;;  %v79_v25 = vld [vmem:[%s1086_s1 + $0xd8] sm:$0xff]  ;;  %v40_v26 = vld [vmem:[%s1085_s0 + $0xd0] sm:$0xff] }
  0x17   :  { %v215_v1 = vsel %vm166_vm0, %v144_v55, 0.0  ;;  %v146_v2 = vmul.f32 %v108_v56, %v108_v56  ;;  %v112_v13 = vsub.f32 %v36_v6, %v74_v7  ;;  %v114_v23 = vsub.f32 %v38_v16, %v76_v17  ;;  %v78_v27 = vld [vmem:[%s1086_s1 + $0xd0] sm:$0xff]  ;;  %v43_v34 = vld [vmem:[%s1085_s0 + $0xe8] sm:$0xff]  ;;  %v42_v36 = vld [vmem:[%s1085_s0 + $0xe0] sm:$0xff] }
  0x18   :  { %195 = vadd.xlane.f32.xlu1 %v194_v62  ;;  %192 = vadd.xlane.f32.xlu0 %v191_v0  ;;  %v218_v62 = vsel %vm166_vm0, %v145_v51, 0.0  ;;  %v111_v0 = vsub.f32 %v35_v57, %v73_v58  ;;  %v224_v8 = vsel %vm166_vm0, %v147_v63, 0.0  ;;  %v148_v12 = vmul.f32 %v110_v3, %v110_v3  ;;  %v81_v35 = vld [vmem:[%s1086_s1 + $0xe8] sm:$0xff]  ;;  %v80_v37 = vld [vmem:[%s1086_s1 + $0xe0] sm:$0xff]  ;;  %v45_v46 = vld [vmem:[%s1085_s0 + $0xf8] sm:$0xff] }
  0x19   :  { %v221_v11 = vsel %vm166_vm0, %v146_v2, 0.0  ;;  %v150_v22 = vmul.f32 %v112_v13, %v112_v13  ;;  %v152_v32 = vmul.f32 %v114_v23, %v114_v23  ;;  %v116_v33 = vsub.f32 %v40_v26, %v78_v27  ;;  %v83_v49 = vld [vmem:[%s1086_s1 + $0xf8] sm:$0xff]  ;;  %v82_v51 = vld [vmem:[%s1086_s1 + $0xf0] sm:$0xff]  ;;  %v291_v7 = vld [vmem:[%s1087_s2 + $0x48] sm:$0xff] }
  0x1a   :  { %v149_v9 = vmul.f32 %v111_v0, %v111_v0  ;;  %v227_v21 = vsel %vm166_vm0, %v148_v12, 0.0  ;;  %v119_v40 = vsub.f32 %v43_v34, %v81_v35  ;;  %v118_v44 = vsub.f32 %v42_v36, %v80_v37  ;;  %v284_v4 = vld [vmem:[%s1087_s2 + $0x10] sm:$0xff]  ;;  %v295_v23 = vld [vmem:[%s1087_s2 + $0x68] sm:$0xff] }
  0x1b   :  { %v233_v31 = vsel %vm166_vm0, %v150_v22, 0.0  ;;  %v239_v42 = vsel %vm166_vm0, %v152_v32, 0.0  ;;  %v154_v43 = vmul.f32 %v116_v33, %v116_v33  ;;  %v121_v55 = vsub.f32 %v45_v46, %v83_v49  ;;  %v288_v5 = vld [vmem:[%s1087_s2 + $0x30] sm:$0xff] }
  0x1c   :  { %201 = vadd.xlane.f32.xlu1 %v200_v14  ;;  %198 = vadd.xlane.f32.xlu0 %v197_v19  ;;  %v39_v14 = vld [vmem:[%s1085_s0 + $0xc8] sm:$0xff]  ;;  %v230_v18 = vsel %vm166_vm0, %v149_v9, 0.0  ;;  %v151_v19 = vmul.f32 %v113_v10, %v113_v10  ;;  %v156_v57 = vmul.f32 %v118_v44, %v118_v44  ;;  %v165_v2 = vmul.f32 %v700_v41, %v700_v41  ;;  %v285_v41 = vld [vmem:[%s1087_s2 + $0x18] sm:$0xff]  ;;  %v290_v9 = vld [vmem:[%s1087_s2 + $0x40] sm:$0xff] }
  0x1d   :  { %v115_v20 = vsub.f32 %v39_v14, %v77_v15  ;;  %v245_v56 = vsel %vm166_vm0, %v154_v43, 0.0  ;;  %v159_v61 = vmul.f32 %v121_v55, %v121_v55  ;;  %440 = vrcp.f32 %v284_v4  ;;  %v293_v15 = vld [vmem:[%s1087_s2 + $0x58] sm:$0xff]  ;;  %v292_v17 = vld [vmem:[%s1087_s2 + $0x50] sm:$0xff] }
  0x1e   :  { %v236_v28 = vsel %vm166_vm0, %v151_v19, 0.0  ;;  %v279_v3 = vsel %vm278_vm1, %v165_v2, 0.0  ;;  %v296_v33 = vld [vmem:[%s1087_s2 + $0x70] sm:$0xff] }
  0x1f   :  { %v260_v0 = vsel %vm166_vm0, %v159_v61, 0.0  ;;  %v303_v61 = vld [vmem:[%s1087_s2 + $0xa8] sm:$0xff] }
  0x20   :  { %207 = vadd.xlane.f32.xlu1 %v206_v29  ;;  %204 = vadd.xlane.f32.xlu0 %v203_v30  ;;  %v153_v29 = vmul.f32 %v115_v20, %v115_v20  ;;  %v117_v30 = vsub.f32 %v41_v24, %v79_v25  ;;  %v294_v25 = vld [vmem:[%s1087_s2 + $0x60] sm:$0xff] }
  0x22   :  { %v242_v38 = vsel %vm166_vm0, %v153_v29, 0.0  ;;  %v155_v39 = vmul.f32 %v117_v30, %v117_v30 }
  0x24   :  { %213 = vadd.xlane.f32.xlu1 %v212_v50  ;;  %210 = vadd.xlane.f32.xlu0 %v209_v54  ;;  %v44_v50 = vld [vmem:[%s1085_s0 + $0xf0] sm:$0xff]  ;;  %v248_v52 = vsel %vm166_vm0, %v155_v39, 0.0  ;;  %v157_v54 = vmul.f32 %v119_v40, %v119_v40  ;;  %v299_v39 = vld [vmem:[%s1087_s2 + $0x88] sm:$0xff] }
  0x25   :  { %v120_v58 = vsub.f32 %v44_v50, %v82_v51  ;;  %v301_v51 = vld [vmem:[%s1087_s2 + $0x98] sm:$0xff] }
  0x26   :  { %v254_v60 = vsel %vm166_vm0, %v157_v54, 0.0  ;;  %v300_v54 = vld [vmem:[%s1087_s2 + $0x90] sm:$0xff] }
  0x27   :  { %v158_v63 = vmul.f32 %v120_v58, %v120_v58 }
  0x28   :  { %219 = vadd.xlane.f32.xlu1 %v218_v62  ;;  %216 = vadd.xlane.f32.xlu0 %v215_v1  ;;  %v251_v62 = vsel %vm166_vm0, %v156_v57, 0.0 }
  0x29   :  { %v257_v1 = vsel %vm166_vm0, %v158_v63, 0.0  ;;  %v302_v63 = vld [vmem:[%s1087_s2 + $0xa0] sm:$0xff] }
  0x2a   :  { %v441_v6 = vpop.eup %440 }
  0x2c   :  { %225 = vadd.xlane.f32.xlu1 %v224_v8  ;;  %222 = vadd.xlane.f32.xlu0 %v221_v11 }
  0x30   :  { %231 = vadd.xlane.f32.xlu1 %v230_v18  ;;  %228 = vadd.xlane.f32.xlu0 %v227_v21 }
  0x34   :  { %237 = vadd.xlane.f32.xlu1 %v236_v28  ;;  %234 = vadd.xlane.f32.xlu0 %v233_v31  ;;  %v297_v31 = vld [vmem:[%s1087_s2 + $0x78] sm:$0xff] }
  0x38   :  { %243 = vadd.xlane.f32.xlu1 %v242_v38  ;;  %240 = vadd.xlane.f32.xlu0 %v239_v42  ;;  %v298_v42 = vld [vmem:[%s1087_s2 + $0x80] sm:$0xff] }
  0x3c   :  { %249 = vadd.xlane.f32.xlu1 %v248_v52  ;;  %246 = vadd.xlane.f32.xlu0 %v245_v56 }
  0x40   :  { %255 = vadd.xlane.f32.xlu1 %v254_v60  ;;  %252 = vadd.xlane.f32.xlu0 %v251_v62 }
  0x44   :  { %261 = vadd.xlane.f32.xlu1 %v260_v0  ;;  %258 = vadd.xlane.f32.xlu0 %v257_v1 }
  0x48   :  { %267 = vadd.xlane.f32.xlu1 %v709_v45  ;;  %264 = vadd.xlane.f32.xlu0 %v712_v47  ;;  %v282_v45 = vld [vmem:[%s1087_s2] sm:$0xff]  ;;  %v283_v47 = vld [vmem:[%s1087_s2 + $0x8] sm:$0xff] }
  0x49   :  { %442 = vrcp.f32 %v282_v45  ;;  %v305_v45 = vld [vmem:[%s1087_s2 + $0xb8] sm:$0xff] }
  0x4a   :  { %444 = vrcp.f32 %v285_v41 }
  0x4b   :  { %446 = vrcp.f32 %v283_v47  ;;  %v304_v47 = vld [vmem:[%s1087_s2 + $0xb0] sm:$0xff] }
  0x4c   :  { %273 = vadd.xlane.f32.xlu1 %v715_v48  ;;  %270 = vadd.xlane.f32.xlu0 %v719_v53  ;;  %v287_v48 = vld [vmem:[%s1087_s2 + $0x28] sm:$0xff]  ;;  %v286_v53 = vld [vmem:[%s1087_s2 + $0x20] sm:$0xff] }
  0x4d   :  { %448 = vrcp.f32 %v287_v48 }
  0x4e   :  { %450 = vrcp.f32 %v286_v53 }
  0x50   :  { %280 = vadd.xlane.f32.xlu1 %v279_v3  ;;  %276 = vadd.xlane.f32.xlu0 %v729_v59  ;;  %v289_v59 = vld [vmem:[%s1087_s2 + $0x38] sm:$0xff] }
  0x51   :  { %452 = vrcp.f32 %v289_v59 }
  0x52   :  { %454 = vrcp.f32 %v288_v5 }
  0x53   :  { %456 = vrcp.f32 %v291_v7  ;;  %v307_v7 = vld [vmem:[%s1087_s2 + $0xc8] sm:$0xff] }
  0x54   :  { %458 = vrcp.f32 %v290_v9  ;;  %v306_v9 = vld [vmem:[%s1087_s2 + $0xc0] sm:$0xff] }
  0x55   :  { %460 = vrcp.f32 %v293_v15  ;;  %v309_v15 = vld [vmem:[%s1087_s2 + $0xd8] sm:$0xff] }
  0x56   :  { %v443_v8 = vpop.eup %442  ;;  %462 = vrcp.f32 %v292_v17  ;;  %v308_v17 = vld [vmem:[%s1087_s2 + $0xd0] sm:$0xff] }
  0x57   :  { %v445_v13 = vpop.eup %444  ;;  %464 = vrcp.f32 %v295_v23  ;;  %v311_v23 = vld [vmem:[%s1087_s2 + $0xe8] sm:$0xff] }
  0x58   :  { %v447_v16 = vpop.eup %446  ;;  %466 = vrcp.f32 %v294_v25  ;;  %v310_v25 = vld [vmem:[%s1087_s2 + $0xe0] sm:$0xff] }
  0x59   :  { %468 = vrcp.f32 %v297_v31  ;;  %v313_v31 = vld [vmem:[%s1087_s2 + $0xf8] sm:$0xff] }
  0x5a   :  { %v449_v21 = vpop.eup %448  ;;  %470 = vrcp.f32 %v296_v33  ;;  %v312_v33 = vld [vmem:[%s1087_s2 + $0xf0] sm:$0xff] }
  0x5b   :  { %v451_v24 = vpop.eup %450  ;;  %472 = vrcp.f32 %v299_v39  ;;  %v315_v39 = vld [vmem:[%s1087_s2 + $0x108] sm:$0xff] }
  0x5c   :  { %474 = vrcp.f32 %v298_v42  ;;  %v314_v42 = vld [vmem:[%s1087_s2 + $0x100] sm:$0xff] }
  0x5d   :  { %476 = vrcp.f32 %v301_v51  ;;  %v317_v51 = vld [vmem:[%s1087_s2 + $0x118] sm:$0xff] }
  0x5e   :  { %v453_v29 = vpop.eup %452  ;;  %478 = vrcp.f32 %v300_v54  ;;  %v316_v54 = vld [vmem:[%s1087_s2 + $0x110] sm:$0xff] }
  0x5f   :  { %v455_v32 = vpop.eup %454  ;;  %480 = vrcp.f32 %v303_v61  ;;  %v319_v61 = vld [vmem:[%s1087_s2 + $0x128] sm:$0xf] }
  0x60   :  { %v457_v37 = vpop.eup %456  ;;  %482 = vrcp.f32 %v302_v63  ;;  %v318_v63 = vld [vmem:[%s1087_s2 + $0x120] sm:$0xff] }
  0x61   :  { %v459_v40 = vpop.eup %458  ;;  %484 = vrcp.f32 %v305_v45 }
  0x62   :  { %v461_v49 = vpop.eup %460  ;;  %486 = vrcp.f32 %v304_v47 }
  0x63   :  { %v463_v52 = vpop.eup %462  ;;  %488 = vrcp.f32 %v307_v7 }
  0x64   :  { %v465_v58 = vpop.eup %464  ;;  %490 = vrcp.f32 %v306_v9 }
  0x65   :  { %v467_v62 = vpop.eup %466  ;;  %492 = vrcp.f32 %v309_v15 }
  0x66   :  { %v469_v3 = vpop.eup %468  ;;  %494 = vrcp.f32 %v308_v17 }
  0x67   :  { %v471_v41 = vpop.eup %470  ;;  %496 = vrcp.f32 %v311_v23 }
  0x68   :  { %v473_v5 = vpop.eup %472  ;;  %498 = vrcp.f32 %v310_v25 }
  0x69   :  { %500 = vrcp.f32 %v313_v31 }
  0x6a   :  { %502 = vrcp.f32 %v312_v33 }
  0x6b   :  { %504 = vrcp.f32 %v315_v39 }
  0x91   :  { %v175_v10 = vpop.xlane.xlu1 %174  ;;  %v169_v12 = vpop.xlane.xlu0 %168 }
  0x92   :  { %v325_v11 = vmul.f32 %v441_v6, %v175_v10  ;;  %v321_v14 = vmul.f32 %v443_v8, %v169_v12  ;;  %v475_v8 = vpop.eup %474  ;;  %506 = vrcp.f32 %v314_v42 }
  0x94   :  { %399 = vst.msk [vmem:[%s1088_s3 + $0x10] sm:$0xff] %vm396_vm2, %v325_v11  ;;  %397 = vst.msk [vmem:[%s1088_s3] sm:$0xff] %vm396_vm2, %v321_v14 }
  0x95   :  { %v178_v18 = vpop.xlane.xlu1 %177  ;;  %v172_v20 = vpop.xlane.xlu0 %171 }
  0x96   :  { %v327_v19 = vmul.f32 %v445_v13, %v178_v18  ;;  %v323_v22 = vmul.f32 %v447_v16, %v172_v20  ;;  %v477_v13 = vpop.eup %476  ;;  %508 = vrcp.f32 %v317_v51 }
  0x97   :  { %v479_v16 = vpop.eup %478  ;;  %510 = vrcp.f32 %v316_v54 }
  0x98   :  { %400 = vst.msk [vmem:[%s1088_s3 + $0x18] sm:$0xff] %vm396_vm2, %v327_v19  ;;  %398 = vst.msk [vmem:[%s1088_s3 + $0x8] sm:$0xff] %vm396_vm2, %v323_v22 }
  0x99   :  { %v184_v26 = vpop.xlane.xlu1 %183  ;;  %v181_v28 = vpop.xlane.xlu0 %180 }
  0x9a   :  { %v331_v27 = vmul.f32 %v449_v21, %v184_v26  ;;  %v329_v30 = vmul.f32 %v451_v24, %v181_v28  ;;  %v481_v21 = vpop.eup %480  ;;  %512 = vrcp.f32 %v319_v61 }
  0x9b   :  { %v483_v24 = vpop.eup %482  ;;  %514 = vrcp.f32 %v318_v63 }
  0x9c   :  { %402 = vst.msk [vmem:[%s1088_s3 + $0x28] sm:$0xff] %vm396_vm2, %v331_v27  ;;  %401 = vst.msk [vmem:[%s1088_s3 + $0x20] sm:$0xff] %vm396_vm2, %v329_v30 }
  0x9d   :  { %v190_v34 = vpop.xlane.xlu1 %189  ;;  %v187_v36 = vpop.xlane.xlu0 %186 }
  0x9e   :  { %v335_v35 = vmul.f32 %v453_v29, %v190_v34  ;;  %v333_v38 = vmul.f32 %v455_v32, %v187_v36  ;;  %v485_v29 = vpop.eup %484 }
  0x9f   :  { %v487_v32 = vpop.eup %486 }
  0xa0   :  { %404 = vst.msk [vmem:[%s1088_s3 + $0x38] sm:$0xff] %vm396_vm2, %v335_v35  ;;  %403 = vst.msk [vmem:[%s1088_s3 + $0x30] sm:$0xff] %vm396_vm2, %v333_v38 }
  0xa1   :  { %v196_v43 = vpop.xlane.xlu1 %195  ;;  %v193_v46 = vpop.xlane.xlu0 %192 }
  0xa2   :  { %v339_v44 = vmul.f32 %v457_v37, %v196_v43  ;;  %v337_v50 = vmul.f32 %v459_v40, %v193_v46  ;;  %v489_v37 = vpop.eup %488 }
  0xa3   :  { %v491_v40 = vpop.eup %490 }
  0xa4   :  { %406 = vst.msk [vmem:[%s1088_s3 + $0x48] sm:$0xff] %vm396_vm2, %v339_v44  ;;  %405 = vst.msk [vmem:[%s1088_s3 + $0x40] sm:$0xff] %vm396_vm2, %v337_v50 }
  0xa5   :  { %v202_v55 = vpop.xlane.xlu1 %201  ;;  %v199_v57 = vpop.xlane.xlu0 %198 }
  0xa6   :  { %v343_v56 = vmul.f32 %v461_v49, %v202_v55  ;;  %v341_v60 = vmul.f32 %v463_v52, %v199_v57  ;;  %v493_v49 = vpop.eup %492 }
  0xa7   :  { %v495_v52 = vpop.eup %494 }
  0xa8   :  { %408 = vst.msk [vmem:[%s1088_s3 + $0x58] sm:$0xff] %vm396_vm2, %v343_v56  ;;  %407 = vst.msk [vmem:[%s1088_s3 + $0x50] sm:$0xff] %vm396_vm2, %v341_v60 }
  0xa9   :  { %v208_v0 = vpop.xlane.xlu1 %207  ;;  %v205_v2 = vpop.xlane.xlu0 %204 }
  0xaa   :  { %v347_v1 = vmul.f32 %v465_v58, %v208_v0  ;;  %v345_v4 = vmul.f32 %v467_v62, %v205_v2  ;;  %v497_v58 = vpop.eup %496 }
  0xab   :  { %v499_v62 = vpop.eup %498 }
  0xac   :  { %410 = vst.msk [vmem:[%s1088_s3 + $0x68] sm:$0xff] %vm396_vm2, %v347_v1  ;;  %409 = vst.msk [vmem:[%s1088_s3 + $0x60] sm:$0xff] %vm396_vm2, %v345_v4 }
  0xad   :  { %v214_v48 = vpop.xlane.xlu1 %213  ;;  %v211_v59 = vpop.xlane.xlu0 %210 }
  0xae   :  { %v351_v53 = vmul.f32 %v469_v3, %v214_v48  ;;  %v349_v6 = vmul.f32 %v471_v41, %v211_v59  ;;  %v501_v3 = vpop.eup %500 }
  0xaf   :  { %v503_v45 = vpop.eup %502 }
  0xb0   :  { %412 = vst.msk [vmem:[%s1088_s3 + $0x78] sm:$0xff] %vm396_vm2, %v351_v53  ;;  %411 = vst.msk [vmem:[%s1088_s3 + $0x70] sm:$0xff] %vm396_vm2, %v349_v6  ;;  %v505_v53 = vpop.eup %504 }
  0xb1   :  { %v220_v10 = vpop.xlane.xlu1 %219  ;;  %v217_v12 = vpop.xlane.xlu0 %216 }
  0xb2   :  { %v355_v11 = vmul.f32 %v473_v5, %v220_v10  ;;  %v353_v14 = vmul.f32 %v475_v8, %v217_v12  ;;  %v507_v5 = vpop.eup %506 }
  0xb3   :  { %v509_v9 = vpop.eup %508 }
  0xb4   :  { %414 = vst.msk [vmem:[%s1088_s3 + $0x88] sm:$0xff] %vm396_vm2, %v355_v11  ;;  %413 = vst.msk [vmem:[%s1088_s3 + $0x80] sm:$0xff] %vm396_vm2, %v353_v14  ;;  %v511_v11 = vpop.eup %510 }
  0xb5   :  { %v226_v18 = vpop.xlane.xlu1 %225  ;;  %v223_v20 = vpop.xlane.xlu0 %222 }
  0xb6   :  { %v359_v19 = vmul.f32 %v477_v13, %v226_v18  ;;  %v357_v22 = vmul.f32 %v479_v16, %v223_v20  ;;  %v513_v15 = vpop.eup %512 }
  0xb7   :  { %v515_v17 = vpop.eup %514 }
  0xb8   :  { %416 = vst.msk [vmem:[%s1088_s3 + $0x98] sm:$0xff] %vm396_vm2, %v359_v19  ;;  %415 = vst.msk [vmem:[%s1088_s3 + $0x90] sm:$0xff] %vm396_vm2, %v357_v22 }
  0xb9   :  { %v232_v26 = vpop.xlane.xlu1 %231  ;;  %v229_v28 = vpop.xlane.xlu0 %228 }
  0xba   :  { %v363_v27 = vmul.f32 %v481_v21, %v232_v26  ;;  %v361_v30 = vmul.f32 %v483_v24, %v229_v28 }
  0xbc   :  { %418 = vst.msk [vmem:[%s1088_s3 + $0xa8] sm:$0xff] %vm396_vm2, %v363_v27  ;;  %417 = vst.msk [vmem:[%s1088_s3 + $0xa0] sm:$0xff] %vm396_vm2, %v361_v30 }
  0xbd   :  { %v238_v34 = vpop.xlane.xlu1 %237  ;;  %v235_v36 = vpop.xlane.xlu0 %234 }
  0xbe   :  { %v367_v35 = vmul.f32 %v485_v29, %v238_v34  ;;  %v365_v38 = vmul.f32 %v487_v32, %v235_v36 }
  0xc0   :  { %420 = vst.msk [vmem:[%s1088_s3 + $0xb8] sm:$0xff] %vm396_vm2, %v367_v35  ;;  %419 = vst.msk [vmem:[%s1088_s3 + $0xb0] sm:$0xff] %vm396_vm2, %v365_v38 }
  0xc1   :  { %v244_v43 = vpop.xlane.xlu1 %243  ;;  %v241_v46 = vpop.xlane.xlu0 %240 }
  0xc2   :  { %v371_v44 = vmul.f32 %v489_v37, %v244_v43  ;;  %v369_v50 = vmul.f32 %v491_v40, %v241_v46 }
  0xc4   :  { %422 = vst.msk [vmem:[%s1088_s3 + $0xc8] sm:$0xff] %vm396_vm2, %v371_v44  ;;  %421 = vst.msk [vmem:[%s1088_s3 + $0xc0] sm:$0xff] %vm396_vm2, %v369_v50 }
  0xc5   :  { %v250_v55 = vpop.xlane.xlu1 %249  ;;  %v247_v57 = vpop.xlane.xlu0 %246 }
  0xc6   :  { %v375_v56 = vmul.f32 %v493_v49, %v250_v55  ;;  %v373_v60 = vmul.f32 %v495_v52, %v247_v57 }
  0xc8   :  { %424 = vst.msk [vmem:[%s1088_s3 + $0xd8] sm:$0xff] %vm396_vm2, %v375_v56  ;;  %423 = vst.msk [vmem:[%s1088_s3 + $0xd0] sm:$0xff] %vm396_vm2, %v373_v60 }
  0xc9   :  { %v256_v0 = vpop.xlane.xlu1 %255  ;;  %v253_v2 = vpop.xlane.xlu0 %252 }
  0xca   :  { %v379_v1 = vmul.f32 %v497_v58, %v256_v0  ;;  %v377_v4 = vmul.f32 %v499_v62, %v253_v2 }
  0xcc   :  { %426 = vst.msk [vmem:[%s1088_s3 + $0xe8] sm:$0xff] %vm396_vm2, %v379_v1  ;;  %425 = vst.msk [vmem:[%s1088_s3 + $0xe0] sm:$0xff] %vm396_vm2, %v377_v4 }
  0xcd   :  { %v262_v41 = vpop.xlane.xlu1 %261  ;;  %v259_v48 = vpop.xlane.xlu0 %258 }
  0xce   :  { %v383_v47 = vmul.f32 %v501_v3, %v262_v41  ;;  %v381_v59 = vmul.f32 %v503_v45, %v259_v48 }
  0xd0   :  { %428 = vst.msk [vmem:[%s1088_s3 + $0xf8] sm:$0xff] %vm396_vm2, %v383_v47  ;;  %427 = vst.msk [vmem:[%s1088_s3 + $0xf0] sm:$0xff] %vm396_vm2, %v381_v59 }
  0xd1   :  { %v268_v6 = vpop.xlane.xlu1 %267  ;;  %v265_v8 = vpop.xlane.xlu0 %264 }
  0xd2   :  { %v387_v7 = vmul.f32 %v505_v53, %v268_v6  ;;  %v385_v10 = vmul.f32 %v507_v5, %v265_v8 }
  0xd4   :  { %430 = vst.msk [vmem:[%s1088_s3 + $0x108] sm:$0xff] %vm396_vm2, %v387_v7  ;;  %429 = vst.msk [vmem:[%s1088_s3 + $0x100] sm:$0xff] %vm396_vm2, %v385_v10 }
  0xd5   :  { %v274_v12 = vpop.xlane.xlu1 %273  ;;  %v271_v14 = vpop.xlane.xlu0 %270 }
  0xd6   :  { %v391_v13 = vmul.f32 %v509_v9, %v274_v12  ;;  %v389_v16 = vmul.f32 %v511_v11, %v271_v14 }
  0xd8   :  { %432 = vst.msk [vmem:[%s1088_s3 + $0x118] sm:$0xff] %vm396_vm2, %v391_v13  ;;  %431 = vst.msk [vmem:[%s1088_s3 + $0x110] sm:$0xff] %vm396_vm2, %v389_v16 }
  0xd9   :  { %v281_v18 = vpop.xlane.xlu1 %280  ;;  %v277_v20 = vpop.xlane.xlu0 %276 }
  0xda   :  { %v395_v19 = vmul.f32 %v513_v15, %v281_v18  ;;  %v393_v21 = vmul.f32 %v515_v17, %v277_v20 }
  0xdc   :  { %435 = vst.msk [vmem:[%s1088_s3 + $0x128] sm:$0xf] %vm434_vm3, %v395_v19 }
  0xdd   :  { %433 = vst.msk [vmem:[%s1088_s3 + $0x120] sm:$0xff] %vm396_vm2, %v393_v21 }

</bundles_post_ra>
